<compile_context>
chip_gen: v6e
topology: v6e:2x2x1
jax: 0.10.0
libtpu: 0.0.40
codegen_flags: <defaults>
</compile_context>

<pallas_src>
import jax
import jax.numpy as jnp
from jax.experimental import pallas as pl
from jax.experimental.pallas import tpu as pltpu


def attention_pool_kernel(aw_ref, x_ref, o_ref):
    # aw_ref: (D, TH)  f32 weights, softmax over D already applied in wrapper
    # x_ref : (TB, D, TH) input tile
    # o_ref : (TB, TH)    pooled output tile
    aw = aw_ref[...]                       # (D, TH) f32
    x = x_ref[...]                         # (TB, D, TH)
    # Fused multiply + sublane-axis reduction; promotes to f32, no relayouts.
    prod = aw[None, :, :] * x              # (TB, D, TH) f32
    o_ref[...] = jnp.sum(prod, axis=1).astype(o_ref.dtype)


def attention_pool(x, attention_weights):
    """x: (B, C, D, H, W), attention_weights: (1, 1, D, H, W) -> (B, C, H, W)."""
    B, C, D, H, W = x.shape
    HW = H * W
    BC = B * C

    # Softmax over depth computed once (tiny (D, HW) op), outside the kernel.
    aw = jax.nn.softmax(
        attention_weights.reshape(D, HW).astype(jnp.float32), axis=0)
    x_flat = x.reshape(BC, D, HW)          # free reshape; no pad / no copy

    itemsize = jnp.dtype(x.dtype).itemsize
    LANE, SUB = 128, 8
    x_block_budget = 8 << 20               # ~8 MiB per x block

    # ---- tile sizing -------------------------------------------------------
    # Lane tile: full HW when modest (full-extent blocks are always legal),
    # otherwise a multiple of 128; boundary blocks of a non-dividing grid are
    # masked by Pallas.
    TH = HW if HW <= 2048 else 2048
    # If even a minimum (8-row) x block would blow the budget (large D),
    # shrink the lane tile first, keeping it a multiple of 128.
    while TH > LANE and SUB * D * TH * itemsize > x_block_budget:
        TH = ((TH // 2 + LANE - 1) // LANE) * LANE

    # BC tile: as large as the budget allows, sublane-aligned (or full extent).
    tb = max(1, x_block_budget // (D * TH * itemsize))
    if tb >= BC:
        TB = BC
    else:
        TB = min(BC, max(SUB, (tb // SUB) * SUB))

    # Ensure >= 2 programs along a parallel axis (v7x megacore; no-op v5e/v6e).
    if (-(-BC // TB)) * (-(-HW // TH)) < 2:
        if TH >= 2 * LANE:
            TH = ((TH // 2 + LANE - 1) // LANE) * LANE
        elif TB >= 2 * SUB:
            TB = max(SUB, (TB // 2 // SUB) * SUB)

    n_i = pl.cdiv(BC, TB)                  # BC tiles (inner / fastest axis)
    n_j = pl.cdiv(HW, TH)                  # HW tiles (outer axis)

    out_flat = pl.pallas_call(
        attention_pool_kernel,
        out_shape=jax.ShapeDtypeStruct((BC, HW), x.dtype),
        grid=(n_j, n_i),
        in_specs=[
            # weights: block index constant across the inner (i) loop -> not
            # re-fetched every grid step
            pl.BlockSpec((D, TH), lambda j, i: (0, j)),
            # streaming input, double-buffered by the Pallas pipeline
            pl.BlockSpec((TB, D, TH), lambda j, i: (i, 0, j)),
        ],
        out_specs=pl.BlockSpec((TB, TH), lambda j, i: (i, j)),
        compiler_params=pltpu.CompilerParams(
            dimension_semantics=("parallel", "parallel"),
            vmem_limit_bytes=48 << 20,
        ),
    )(aw, x_flat)

    return out_flat.reshape(B, C, H, W)


if __name__ == "__main__":
    # Small shapes consistent with the module's forward.
    B, C, D, H, W = 2, 4, 8, 16, 16

    key = jax.random.PRNGKey(0)
    x = jax.random.normal(key, (B, C, D, H, W), dtype=jnp.float32)

    # nn.Parameter(torch.ones(1, 1, depth, height, width)) -- deterministic init.
    attention_weights = jnp.ones((1, 1, D, H, W), dtype=jnp.float32)

    out = attention_pool(x, attention_weights)
    out = jax.block_until_ready(out)

    # Reference in plain JAX (matches the PyTorch forward semantics).
    ref = jnp.sum(jax.nn.softmax(attention_weights, axis=2) * x, axis=2)
    assert out.shape == (B, C, H, W)
    assert jnp.allclose(out, ref, atol=1e-5, rtol=1e-5)

    print("KERNEL_OK")
</pallas_src>

<mosaic_0001>
module attributes {stable_mosaic.version = 11 : i64} {
  func.func @attention_pool_kernel(%arg0: i32, %arg1: i32, %arg2: memref<8x128xf32, #tpu.memory_space<vmem>>, %arg3: memref<8x8x128xf32, #tpu.memory_space<vmem>>, %arg4: memref<8x128xf32, #tpu.memory_space<vmem>>) attributes {dimension_semantics = [#tpu.dimension_semantics<parallel>, #tpu.dimension_semantics<parallel>], iteration_bounds = array<i64: 2, 1>, scalar_prefetch = 0 : i64, scratch_operands = 0 : i64, tpu.core_type = #tpu.core_type<tc>, window_params = [{transform_indices = @transform_0, window_bounds = array<i64: 8, 128>}, {transform_indices = @transform_1, window_bounds = array<i64: 8, 8, 128>}, {transform_indices = @transform_2, window_bounds = array<i64: 8, 128>}]} {
    %c0 = arith.constant 0 : index
    %c0_0 = arith.constant 0 : index
    %0 = vector.load %arg2[%c0, %c0_0] : memref<8x128xf32, #tpu.memory_space<vmem>>, vector<8x128xf32>
    %c0_1 = arith.constant 0 : index
    %c0_2 = arith.constant 0 : index
    %c0_3 = arith.constant 0 : index
    %1 = vector.load %arg3[%c0_1, %c0_2, %c0_3] : memref<8x8x128xf32, #tpu.memory_space<vmem>>, vector<8x8x128xf32>
    %2 = vector.shape_cast %0 : vector<8x128xf32> to vector<1x8x128xf32>
    %3 = vector.broadcast %2 : vector<1x8x128xf32> to vector<8x8x128xf32>
    %4 = arith.mulf %3, %1 : vector<8x8x128xf32>
    %cst = arith.constant dense<0.000000e+00> : vector<8x128xf32>
    %5 = vector.multi_reduction <add>, %4, %cst [1] : vector<8x8x128xf32> to vector<8x128xf32>
    %c0_4 = arith.constant 0 : index
    %c0_5 = arith.constant 0 : index
    %6 = vector.load %arg4[%c0_4, %c0_5] : memref<8x128xf32, #tpu.memory_space<vmem>>, vector<8x128xf32>
    tpu.vector_store %arg4[%c0_4, %c0_5], %5 {strides = array<i32>} : memref<8x128xf32, #tpu.memory_space<vmem>>, vector<8x128xf32>,
    return
  }
  func.func @transform_0(%arg0: i32, %arg1: i32) -> (i32, i32) {
    %c0_i32 = arith.constant 0 : i32
    %c0_i32_0 = arith.constant 0 : i32
    return %c0_i32, %arg0 : i32, i32
  }
  func.func @transform_1(%arg0: i32, %arg1: i32) -> (i32, i32, i32) {
    %c0_i32 = arith.constant 0 : i32
    %c0_i32_0 = arith.constant 0 : i32
    return %arg1, %c0_i32, %arg0 : i32, i32, i32
  }
  func.func @transform_2(%arg0: i32, %arg1: i32) -> (i32, i32) {
    %c0_i32 = arith.constant 0 : i32
    return %arg1, %arg0 : i32, i32
  }
}

</mosaic_0001>

<bundles_post_ra>
// kernel: tpu_custom_call.1
= control target key start
LH: loop header
LB: loop body
LE: loop exit
PB: predicated region body
PF: predicated region fallthrough
CT: control target
= control target key end

     0   :  { %7 = vsyncpa [#allocation3], 0  ;;  %s847_s0 = inlined_call_operand.hbm [shape: f32[8,256], index: 0, kind: input, shape index: {}]   ;;  %s848_s1 = inlined_call_operand.hbm [shape: f32[8,8,256], index: 1, kind: input, shape index: {}]   ;;  %s849_s2 = inlined_call_operand.hbm [shape: f32[8,256], index: 2, kind: output, shape index: {}]  }
   0x1   :  { %9 = vsyncpa [#allocation3 + $0x1], 0 }
   0x2   :  { %10 = vsyncpa [#allocation6], 0 }
   0x3   :  { %12 = vsyncpa [#allocation6 + $0x1], 0 }
   0x4   :  { %13 = vsyncpa [#allocation4], 0 }
   0x5   :  { %15 = vsyncpa [#allocation4 + $0x1], 0  ;;  %s677_s9 = smov 0   ;;  %s679_s10 = smov 0  }
   0x6   :  { %s681_s11 = smov 0   ;;  %s683_s12 = smov 0  }
   0x7   :  { %s685_s13 = smov 0   ;;  %s687_s14 = smov 0  }
   0x8 LB: > { %s428_s15 = sadd.s32 4294967295, %s654_s14   ;;  %s429_s16 = sadd.s32 4294967294, %s654_s14   ;;  %s654_s14 = sphi %s687_s14, %s21_s14   ;;  %s650_s13 = sphi %s685_s13, %s862_s13   ;;  %s646_s12 = sphi %s683_s12, %s861_s12   ;;  %s642_s11 = sphi %s681_s11, %s860_s11   ;;  %s638_s10 = sphi %s679_s10, %s859_s10   ;;  %s634_s9 = sphi %s677_s9, %s858_s9  }
   0x9   : > { %s33_s17 = sadd.s32 1, %s650_s13  ;;  %s40_s18 = sadd.s32 1, %s642_s11 }
   0xa   : > { %p35_p0 = scmp.ge.s32.totalorder %s33_s17, 2  ;;  %p47_p1 = scmp.ne.s32.totalorder %s642_s11, %s638_s10 }
   0xb   : > { %p48_p2 = scmp.eq.s32.totalorder %s654_s14, 0  ;;  %p53_p3 = scmp.ne.s32.totalorder %s638_s10, %s634_s9 }
   0xc   : > { %s864_s17 = smov (%p35_p0, %s33_s17), 0  ;;  %p54_p5 = scmp.eq.s32.totalorder %s428_s15, 0 }
   0xd   : > { %p718_p4 = por %p48_p2, %p47_p1  ;;  %s37_s20 = ssub.s32 %s650_s13, %s864_s17 }
   0xe   : > { %p107_p6 = scmp.eq.s32.totalorder %s428_s15, 1  ;;  %p38_p7 = scmp.eq.s32.totalorder %s37_s20, 0 }
   0xf   : > { %p724_p8 = por %p54_p5, %p53_p3  ;;  %p113_p10 = scmp.eq.s32.totalorder %s429_s16, 1 }
  0x10   : > { %p728_p9 = por %p107_p6, %p47_p1  ;;  %p461_p13 = scmp.lt.s32.totalorder %s654_s14, 2 }
  0x11   : > { %s733_s23 = scalar_select %p38_p7, %s642_s11, %s40_s18  }
  0x12   : > { %p735_p11 = por %p113_p10, %p53_p3  ;;  %s742_s25 = sand.u32 1, %s642_s11  }
  0x13   : > { %s432_s26 = sshll.u32 %s742_s25, 3  ;;  %s433_s27 = sshll.u32 %s650_s13, 7 }
  0x14   : > { %s853_s24 = scalar_select %p735_p11, 1, 0 }
  0x15   : > { %s142_s30 = scalar_lea.hbm %s847_s0, %s433_s27  ;;  %s137_s3 = scalar_lea.vmem [#allocation2], %s432_s26 }
  0x16   : > { %s144_s4 = sshll.u32 %s137_s3, 4  ;;  %p751_p0 = pnand %p461_p13, %p718_p4  ;;  %s145_s4 = int_to_ptr.vmem [resolvable:$true] %s144_s4 }
  0x17   : > { %s434_s6 = sshll.u32 %s742_s25, 6  ;;  %s134_s7 = scalar_lea.sflag [#allocation3], %s742_s25 }
  0x18   : > { %p516_p1 = pneg %p751_p0  ;;  %s527_s8 = scalar_lea.vmem %s145_s4, 128 }
  0x19   : > { %p528_p2 = scmp.ne.s32.totalorder %s145_s4, %s527_s8  ;;  %s656_s15 = smov [#allocation2]  }
  0x1a   : > { %s532_s16 = sshll.u32 %s656_s15, 4  ;;  %s533_s16 = int_to_ptr.vmem [resolvable:$false] %s532_s16 }
  0x1b   : > { %p530_p3 = pnand %p528_p2, %p516_p1  ;;  %s534_s18 = scalar_lea.vmem %s533_s16, 256 }
  0x1c   : > { %p535_p4 = scmp.lt.s32.totalorder %s145_s4, %s533_s16  ;;  %p536_p6 = scmp.lt.s32.totalorder %s534_s18, %s527_s8 }
  0x1d   : > { %p531_p5 = pneg %p530_p3 }
  0x1e   : > { %p537_p7 = por %p536_p6, %p535_p4 }
  0x20   : > { %p538_p10 = pnand %p537_p7, %p531_p5 }
  0x22   : > { %541 = shalt.err (!%p538_p10)
}
  0x23   : > { %453 = dma.hbm_to_vmem [thread:$0]  (!%p751_p0), %s142_s30, 128, %s145_s4, %s134_s7  }
  0x24   : > { %s163_s26 = scalar_lea.hbm %s848_s1, %s433_s27  ;;  %p436_p13 = scmp.ge.s32.totalorder %s654_s14, 1 }
  0x25   : > { %p172_p2 = scmp.lt.s32.totalorder %s654_s14, 3  ;;  %s155_s28 = scalar_lea.vmem [#allocation5], %s434_s6 }
  0x26   : > { %s164_s29 = sshll.u32 %s155_s28, 4  ;;  %s152_s8 = scalar_lea.sflag [#allocation6], %s742_s25  ;;  %s165_s29 = int_to_ptr.vmem [resolvable:$true] %s164_s29 }
  0x27   : > { %p769_p3 = pnand %p436_p13, %p172_p2  ;;  %s555_s15 = scalar_lea.vmem %s165_s29, 1024 }
  0x28   : > { %p556_p5 = scmp.ne.s32.totalorder %s165_s29, %s555_s15  ;;  %s657_s30 = smov [#allocation5]  }
  0x29   : > { %s560_s4 = sshll.u32 %s657_s30, 4  ;;  %s561_s4 = int_to_ptr.vmem [resolvable:$false] %s560_s4 }
  0x2a   : > { %p558_p4 = pnand %p556_p5, %p516_p1  ;;  %s562_s27 = scalar_lea.vmem %s561_s4, 2048 }
  0x2b   : > { %p563_p7 = scmp.lt.s32.totalorder %s165_s29, %s561_s4  ;;  %p564_p10 = scmp.lt.s32.totalorder %s562_s27, %s555_s15 }
  0x2c   : > { %p559_p6 = pneg %p558_p4 }
  0x2d   : > { %p565_p12 = por %p564_p10, %p563_p7 }
  0x2f   : > { %p566_p11 = pnand %p565_p12, %p559_p6 }
  0x31   : > { %569 = shalt.err (!%p566_p11)
}
  0x32   : > { %s658_s6 = smov 256   ;;  %s659_s7 = smov 128  }
  0x33   : > { %s660_s16 = smov 8   ;;  %176 = sbr.rel (%p769_p3) target bundleno = 96 (0x60), region = 28 }
  0x34   : > { %456 = dma.hbm_to_vmem [thread:$0]  (!%p751_p0), %s163_s26, 1024, %s165_s29, %s152_s8, %s658_s6, %s659_s7, %s660_s16  }
  0x35   : > { %s782_s25 = sand.u32 (!%p769_p3), 1, %s638_s10  }
  0x36   : > { %s437_s18 = sshll.u32 (!%p769_p3), %s782_s25, 3  ;;  %s179_s19 = scalar_lea.sflag (!%p769_p3), [#allocation3], %s782_s25 }
  0x37   : > { %s182_s20 = scalar_lea.vmem (!%p769_p3), [#allocation2], %s437_s18 }
  0x38   : > { %621 = dma.done.wait (%p724_p8), %s179_s19, 128  }
  0x39   : > { %623 = vsyncadd (%p724_p8), %s179_s19, 4294967168  ;;  %s438_s5 = sshll.u32 %s782_s25, 6  ;;  %s188_s26 = scalar_lea.sflag [#allocation6], %s782_s25 }
  0x3a   : > { %s191_s28 = scalar_lea.vmem [#allocation5], %s438_s5 }
  0x3b   : > { %625 = dma.done.wait (%p724_p8), %s188_s26, 1024  }
  0x3c   : > { %627 = vsyncadd (%p724_p8), %s188_s26, 4294966272  ;;  %v218_v0 = vld [vmem:[%s182_s20] sm:$0xff]  ;;  %v219_v1 = vld [vmem:[%s191_s28] sm:$0xff]  ;;  %vm291_vm0 = vcmask 1041409   ;;  %vm293_vm1 = vcmask 1042434   ;;  %vm295_vm2 = vcmask 1043459  }
  0x3d   : > { %v220_v2 = vld [vmem:[%s191_s28 + $0x8] sm:$0xff]  ;;  %v221_v3 = vld [vmem:[%s191_s28 + $0x10] sm:$0xff]  ;;  %v222_v4 = vld [vmem:[%s191_s28 + $0x18] sm:$0xff]  ;;  %v227_v6 = vmul.f32 %v219_v1, %v218_v0  ;;  %vm297_vm3 = vcmask 1044484   ;;  %vm299_vm4 = vcmask 1045509   ;;  %vm301_vm5 = vcmask 1046534  }
  0x3e   : > { %v223_v5 = vld [vmem:[%s191_s28 + $0x20] sm:$0xff]  ;;  %v228_v7 = vmul.f32 %v220_v2, %v218_v0  ;;  %v224_v8 = vld [vmem:[%s191_s28 + $0x28] sm:$0xff]  ;;  %v225_v9 = vld [vmem:[%s191_s28 + $0x30] sm:$0xff]  ;;  %v229_v11 = vmul.f32 %v221_v3, %v218_v0  ;;  %v230_v12 = vmul.f32 %v222_v4, %v218_v0  ;;  %s216_s21 = scalar_lea.vmem [#allocation7], %s437_s18  ;;  %s441_s3 = sshll.u32 %s646_s12, 7  ;;  %vm303_vm6 = vcmask 1047559  }
  0x3f   : > { %v226_v10 = vld [vmem:[%s191_s28 + $0x38] sm:$0xff]  ;;  %v231_v13 = vmul.f32 %v223_v5, %v218_v0  ;;  %v232_v14 = vmul.f32 %v224_v8, %v218_v0  ;;  %v233_v15 = vmul.f32 %v225_v9, %v218_v0  ;;  %v235_v17 = vrot.slane %v227_v6, 4  ;;  %s323_s29 = sshll.u32 %s216_s21, 4  ;;  %s321_s30 = scalar_lea.hbm %s849_s2, %s441_s3  ;;  %s802_s29 = int_to_ptr.vmem [resolvable:$true] %s323_s29 }
  0x40   : > { %v234_v16 = vmul.f32 %v226_v10, %v218_v0  ;;  %v241_v18 = vrot.slane %v228_v7, 4  ;;  %v247_v19 = vrot.slane %v229_v11, 4  ;;  %v253_v20 = vrot.slane %v230_v12, 4  ;;  %s308_s4 = scalar_lea.sflag [#allocation4], %s782_s25  ;;  %s570_s27 = scalar_lea.vmem %s802_s29, 128 }
  0x41   : > { %v259_v21 = vrot.slane %v231_v13, 4  ;;  %v236_v22 = vadd.f32 %v235_v17, %v227_v6  ;;  %v265_v23 = vrot.slane %v232_v14, 4  ;;  %v271_v24 = vrot.slane %v233_v15, 4  ;;  %p571_p8 = scmp.ne.s32.totalorder %s802_s29, %s570_s27  ;;  %s661_s12 = smov [#allocation7]  }
  0x42   : > { %v277_v25 = vrot.slane %v234_v16, 4  ;;  %v242_v26 = vadd.f32 %v241_v18, %v228_v7  ;;  %v248_v27 = vadd.f32 %v247_v19, %v229_v11  ;;  %v254_v28 = vadd.f32 %v253_v20, %v230_v12  ;;  %s574_s6 = sshll.u32 %s661_s12, 4  ;;  %s575_s6 = int_to_ptr.vmem [resolvable:$false] %s574_s6 }
  0x43   : > { %v260_v29 = vadd.f32 %v259_v21, %v231_v13  ;;  %v237_v30 = vrot.slane %v236_v22, 2  ;;  %v266_v31 = vadd.f32 %v265_v23, %v232_v14  ;;  %v272_v32 = vadd.f32 %v271_v24, %v233_v15  ;;  %p572_p11 = pnand %p571_p8, %p728_p9  ;;  %s576_s7 = scalar_lea.vmem %s575_s6, 256 }
  0x44   : > { %v278_v33 = vadd.f32 %v277_v25, %v234_v16  ;;  %v243_v34 = vrot.slane %v242_v26, 2  ;;  %v249_v35 = vrot.slane %v248_v27, 2  ;;  %v255_v36 = vrot.slane %v254_v28, 2  ;;  %p577_p0 = scmp.lt.s32.totalorder %s802_s29, %s575_s6  ;;  %p578_p1 = scmp.lt.s32.totalorder %s576_s7, %s570_s27 }
  0x45   : > { %v261_v37 = vrot.slane %v260_v29, 2  ;;  %v238_v38 = vadd.f32 %v237_v30, %v236_v22  ;;  %v267_v39 = vrot.slane %v266_v31, 2  ;;  %v273_v40 = vrot.slane %v272_v32, 2  ;;  %p573_p12 = pneg %p572_p11 }
  0x46   : > { %v279_v41 = vrot.slane %v278_v33, 2  ;;  %v244_v42 = vadd.f32 %v243_v34, %v242_v26  ;;  %v250_v43 = vadd.f32 %v249_v35, %v248_v27  ;;  %v256_v44 = vadd.f32 %v255_v36, %v254_v28  ;;  %p579_p13 = por %p578_p1, %p577_p0 }
  0x47   : > { %v262_v45 = vadd.f32 %v261_v37, %v260_v29  ;;  %v239_v46 = vrot.slane %v238_v38, 1  ;;  %v268_v47 = vadd.f32 %v267_v39, %v266_v31  ;;  %v274_v48 = vadd.f32 %v273_v40, %v272_v32 }
  0x48   : > { %v280_v49 = vadd.f32 %v279_v41, %v278_v33  ;;  %v245_v50 = vrot.slane %v244_v42, 1  ;;  %v251_v51 = vrot.slane %v250_v43, 1  ;;  %v257_v52 = vrot.slane %v256_v44, 1  ;;  %p580_p2 = pnand %p579_p13, %p573_p12 }
  0x49   : > { %v263_v53 = vrot.slane %v262_v45, 1  ;;  %v240_v54 = vadd.f32 %v239_v46, %v238_v38  ;;  %v269_v55 = vrot.slane %v268_v47, 1  ;;  %v275_v56 = vrot.slane %v274_v48, 1 }
  0x4a   : > { %v246_v57 = vadd.f32 %v245_v50, %v244_v42  ;;  %v252_v58 = vadd.f32 %v251_v51, %v250_v43  ;;  %v258_v59 = vadd.f32 %v257_v52, %v256_v44  ;;  %v281_v60 = vrot.slane %v280_v49, 1 }
  0x4b   : > { %v264_v61 = vadd.f32 %v263_v53, %v262_v45  ;;  %v270_v62 = vadd.f32 %v269_v55, %v268_v47  ;;  %v276_v0 = vadd.f32 %v275_v56, %v274_v48 }
  0x4c   : > { %v292_v63 = vsel %vm291_vm0, %v246_v57, %v240_v54  ;;  %v282_v2 = vadd.f32 %v281_v60, %v280_v49 }
  0x4d   : > { %v294_v1 = vsel %vm293_vm1, %v252_v58, %v292_v63 }
  0x4e   : > { %v296_v3 = vsel %vm295_vm2, %v258_v59, %v294_v1 }
  0x4f   : > { %v298_v4 = vsel %vm297_vm3, %v264_v61, %v296_v3 }
  0x50   : > { %v300_v5 = vsel %vm299_vm4, %v270_v62, %v298_v4 }
  0x51   : > { %v302_v6 = vsel %vm301_vm5, %v276_v0, %v300_v5 }
  0x52   : > { %v304_v7 = vsel %vm303_vm6, %v282_v2, %v302_v6 }
  0x53   : > { %306 = vst [vmem:[%s216_s21] sm:$0xff] %v304_v7 }
  0x54   : > { %583 = shalt.err (!%p580_p2)
}
  0x55   : > { %s584_s16 = scalar_lea.hbm %s321_s30, 128  ;;  %s588_s19 = scalar_lea.hbm %s849_s2, 256 }
  0x56   : > { %p585_p3 = scmp.ne.s32.totalorder %s321_s30, %s584_s16  ;;  %p589_p6 = scmp.lt.s32.totalorder %s321_s30, %s849_s2 }
  0x57   : > { %p590_p7 = scmp.lt.s32.totalorder %s588_s19, %s584_s16 }
  0x58   : > { %p586_p5 = pnand %p585_p3, %p728_p9 }
  0x59   : > { %p591_p10 = por %p590_p7, %p589_p6 }
  0x5a   : > { %p587_p4 = pneg %p586_p5 }
  0x5c   : > { %p592_p8 = pnand %p591_p10, %p587_p4 }
  0x5e   : > { %595 = shalt.err (!%p592_p8)
}
  0x5f   : > { %448 = dma.vmem_to_hbm [thread:$0]  (%p728_p9), %s802_s29, 128, %s321_s30, %s308_s4  }
  0x60 PF: > { %s335_s26 = sand.u32 1, %s634_s9   ;;  %p856_p11 = scmp.ne.s32.totalorder %s853_s24, 0 }
  0x61   : > { %p857_p12 = scmp.ge.s32.totalorder %s654_s14, 2  ;;  %s336_s28 = scalar_lea.sflag [#allocation4], %s335_s26 }
  0x63   : > { %p458_p0 = pnand %p857_p12, %p856_p11 }
  0x65   : > { %p459_p1 = pneg %p458_p0 }
  0x67   : > { %629 = dma.done.wait (%p459_p1), %s336_s28, 128  }
  0x68   : > { %631 = vsyncadd (%p459_p1), %s336_s28, 4294967168  ;;  %s21_s14 = sadd.s32 1, %s654_s14   ;;  %s858_s9 = smov %s638_s10 }
  0x69   : > { %p18_p13 = scmp.ge.s32.totalorder %s21_s14, 4   ;;  %s859_s10 = smov %s642_s11 }
  0x6a   : > { %s860_s11 = smov %s733_s23  ;;  %s861_s12 = smov %s650_s13 }
  0x6b   : > { %s862_s13 = smov %s864_s17  ;;  %20 = sbr.rel (!%p18_p13) target bundleno = 8 (0x8), region = 86 }
  0x70   :  { %341 = vsyncpa [#allocation3], 1 }
  0x71   :  { %343 = vsyncpa [#allocation3 + $0x1], 1 }
  0x72   :  { %344 = vsyncpa [#allocation6], 1 }
  0x73   :  { %346 = vsyncpa [#allocation6 + $0x1], 1 }
  0x74   :  { %347 = vsyncpa [#allocation4], 1 }
  0x75   :  { %349 = vsyncpa [#allocation4 + $0x1], 1 }

</bundles_post_ra>
